<compile_context>
chip_gen: v7x
topology: tpu7x:2x2x1
jax: 0.10.0
libtpu: 0.0.40
codegen_flags: <defaults>
</compile_context>

<pallas_src>
import functools

import jax
import jax.numpy as jnp
from jax.experimental import pallas as pl
from jax.experimental.pallas import tpu as pltpu

EPS = 1e-5
LANE = 128


def _round_up(n, m):
    return ((n + m - 1) // m) * m


def _classifier_kernel(x1_ref, x2_ref, w_ref, o_ref):
    """Fused dual-branch BatchNorm1d (batch stats) + bias-free Linear.

    x1_ref : [B, D1]            f32 non-projected features
    x2_ref : [B, D2]            f32 projected features
    w_ref  : [D1+D2, 2*C_pad]   f32 block-diagonal, gamma-folded, zero-padded weight
    o_ref  : [B, 2*C_pad]       f32 logits for both branches (lane-dense)
    """
    # BN statistics are per-feature over the batch axis, so concatenating the two branches
    # along the feature axis does not mix their statistics.
    x = jnp.concatenate([x1_ref[...], x2_ref[...]], axis=-1)          # [B, D1+D2]

    # One-pass biased batch statistics (PyTorch training-mode normalization).
    mean = jnp.mean(x, axis=0, keepdims=True)                          # [1, D1+D2]
    mean_sq = jnp.mean(x * x, axis=0, keepdims=True)                   # [1, D1+D2]
    var = mean_sq - mean * mean

    y = (x - mean) * jax.lax.rsqrt(var + EPS)                          # gamma folded into w

    # Single block-diagonal matmul; f32 operands, f32 accumulation.
    o_ref[...] = jnp.dot(y, w_ref[...], preferred_element_type=jnp.float32)


@functools.partial(jax.jit, static_argnames=("classnames",))
def _fused_forward(x_non_proj, x_proj, w_fold, bias, *, classnames):
    B, D1 = x_non_proj.shape
    D2 = x_proj.shape[1]
    c_total = w_fold.shape[1]
    c_pad = c_total // 2

    cost = pl.CostEstimate(
        flops=2 * B * c_total * (D1 + D2) + 10 * B * (D1 + D2),
        transcendentals=D1 + D2,  # rsqrt per feature
        bytes_accessed=(x_non_proj.size + x_proj.size + w_fold.size + B * c_total) * 4,
    )

    logits = pl.pallas_call(
        _classifier_kernel,
        out_shape=jax.ShapeDtypeStruct((B, c_total), jnp.float32),
        in_specs=[pl.BlockSpec(memory_space=pltpu.VMEM)] * 3,
        out_specs=pl.BlockSpec(memory_space=pltpu.VMEM),
        cost_estimate=cost,
    )(x_non_proj, x_proj, w_fold)

    # Folded BN-beta contribution (exactly zero under weights_init_kaiming; kept for full
    # BN-affine semantics). Fused by XLA with the slices below — still a single dispatch.
    logits = logits + bias

    # Per-branch class slices taken inside the jit (no extra host dispatches).
    return logits[:, :classnames], logits[:, c_pad:c_pad + classnames]


class ClassifierPallas:
    """JAX/Pallas port of the PyTorch `Classifier` module."""

    D1 = 768  # vision_bottleneck / vision_classifier
    D2 = 512  # vision_bottleneck_proj / vision_classifier_proj

    def __init__(self, classnames, key):
        k1, k2 = jax.random.split(key, 2)
        self.classnames = classnames
        self.c_pad = _round_up(max(classnames, LANE), LANE)  # lane-dense per-branch padding

        # BatchNorm affine params per weights_init_kaiming: gamma=1, beta=0 (beta frozen).
        self.bn_gamma = jnp.ones((self.D1,), jnp.float32)
        self.bn_beta = jnp.zeros((self.D1,), jnp.float32)
        self.bn_proj_gamma = jnp.ones((self.D2,), jnp.float32)
        self.bn_proj_beta = jnp.zeros((self.D2,), jnp.float32)

        # Linear weights, PyTorch layout [C, D], ~ N(0, 0.001^2) per weights_init_classifier.
        self.w_cls = 0.001 * jax.random.normal(k1, (classnames, self.D1), jnp.float32)
        self.w_cls_proj = 0.001 * jax.random.normal(k2, (classnames, self.D2), jnp.float32)

        self._prepare_kernel_params()

    def _prepare_kernel_params(self):
        """Build (once) the gamma-folded, block-diagonal, lane-dense weight and folded bias."""
        C, c_pad = self.classnames, self.c_pad
        D1, D2 = self.D1, self.D2

        # gamma folded into the transposed weights: row d of W.T scaled by gamma[d].
        w1 = self.w_cls.T * self.bn_gamma[:, None]            # [D1, C]
        w2 = self.w_cls_proj.T * self.bn_proj_gamma[:, None]  # [D2, C]

        w_fold = jnp.zeros((D1 + D2, 2 * c_pad), jnp.float32)
        w_fold = w_fold.at[:D1, :C].set(w1)
        w_fold = w_fold.at[D1:, c_pad:c_pad + C].set(w2)
        self.w_fold = w_fold

        # beta contribution folded into a per-class bias (zero here since beta == 0).
        b1 = self.bn_beta @ self.w_cls.T                       # [C]
        b2 = self.bn_proj_beta @ self.w_cls_proj.T             # [C]
        bias = jnp.zeros((1, 2 * c_pad), jnp.float32)
        bias = bias.at[0, :C].set(b1)
        bias = bias.at[0, c_pad:c_pad + C].set(b2)
        self.bias = bias

    def __call__(self, image_features_non_proj, image_features):
        o1, o2 = _fused_forward(image_features_non_proj, image_features,
                                self.w_fold, self.bias, classnames=self.classnames)
        return [o1, o2]


# ----------------------- pure-JAX reference for sanity checks -----------------------

def _reference_f32(x, gamma, beta, w):
    mean = jnp.mean(x, axis=0, keepdims=True)
    var = jnp.mean((x - mean) ** 2, axis=0, keepdims=True)
    y = (x - mean) * jax.lax.rsqrt(var + EPS) * gamma + beta
    return y @ w.T


if __name__ == "__main__":
    key = jax.random.PRNGKey(0)
    k_params, k_x1, k_x2 = jax.random.split(key, 3)

    B = 8            # batch
    CLASSNAMES = 16  # number of classes

    model = ClassifierPallas(CLASSNAMES, k_params)

    image_features_non_proj = jax.random.normal(k_x1, (B, 768), jnp.float32)
    image_features = jax.random.normal(k_x2, (B, 512), jnp.float32)

    cls_score, cls_score_proj = model(image_features_non_proj, image_features)
    jax.block_until_ready(cls_score)
    jax.block_until_ready(cls_score_proj)

    assert cls_score.shape == (B, CLASSNAMES)
    assert cls_score_proj.shape == (B, CLASSNAMES)

    ref0 = _reference_f32(image_features_non_proj, model.bn_gamma, model.bn_beta, model.w_cls)
    ref1 = _reference_f32(image_features, model.bn_proj_gamma, model.bn_proj_beta, model.w_cls_proj)
    assert jnp.allclose(cls_score, ref0, atol=2e-3, rtol=1e-2), \
        float(jnp.max(jnp.abs(cls_score - ref0)))
    assert jnp.allclose(cls_score_proj, ref1, atol=2e-3, rtol=1e-2), \
        float(jnp.max(jnp.abs(cls_score_proj - ref1)))

    print("KERNEL_OK")
</pallas_src>

<mosaic_0001>
module attributes {stable_mosaic.version = 11 : i64} {
  func.func @_classifier_kernel(%arg0: memref<8x768xf32, #tpu.memory_space<vmem>>, %arg1: memref<8x512xf32, #tpu.memory_space<vmem>>, %arg2: memref<1280x256xf32, #tpu.memory_space<vmem>>, %arg3: memref<8x256xf32, #tpu.memory_space<vmem>>) attributes {dimension_semantics = [], scalar_prefetch = 0 : i64, scratch_operands = 0 : i64, tpu.core_type = #tpu.core_type<tc>} {
    %c0 = arith.constant 0 : index
    %c0_0 = arith.constant 0 : index
    %0 = vector.load %arg0[%c0, %c0_0] : memref<8x768xf32, #tpu.memory_space<vmem>>, vector<8x768xf32>
    %c0_1 = arith.constant 0 : index
    %c0_2 = arith.constant 0 : index
    %1 = vector.load %arg1[%c0_1, %c0_2] : memref<8x512xf32, #tpu.memory_space<vmem>>, vector<8x512xf32>
    %2 = tpu.concatenate %0, %1 in 1 : vector<8x768xf32>, vector<8x512xf32> -> vector<8x1280xf32>
    %cst = arith.constant dense<0.000000e+00> : vector<1280xf32>
    %3 = vector.multi_reduction <add>, %2, %cst [0] : vector<8x1280xf32> to vector<1280xf32>
    %4 = vector.shape_cast %3 : vector<1280xf32> to vector<1x1280xf32>
    %cst_3 = arith.constant 8.000000e+00 : f32
    %5 = vector.broadcast %cst_3 : f32 to vector<1x1280xf32>
    %6 = arith.divf %4, %5 : vector<1x1280xf32>
    %7 = arith.mulf %2, %2 : vector<8x1280xf32>
    %cst_4 = arith.constant dense<0.000000e+00> : vector<1280xf32>
    %8 = vector.multi_reduction <add>, %7, %cst_4 [0] : vector<8x1280xf32> to vector<1280xf32>
    %9 = vector.shape_cast %8 : vector<1280xf32> to vector<1x1280xf32>
    %cst_5 = arith.constant 8.000000e+00 : f32
    %10 = vector.broadcast %cst_5 : f32 to vector<1x1280xf32>
    %11 = arith.divf %9, %10 : vector<1x1280xf32>
    %12 = arith.mulf %6, %6 : vector<1x1280xf32>
    %13 = arith.subf %11, %12 : vector<1x1280xf32>
    %14 = vector.broadcast %6 : vector<1x1280xf32> to vector<8x1280xf32>
    %15 = arith.subf %2, %14 : vector<8x1280xf32>
    %cst_6 = arith.constant 9.99999974E-6 : f32
    %16 = vector.broadcast %cst_6 : f32 to vector<1x1280xf32>
    %17 = arith.addf %13, %16 : vector<1x1280xf32>
    %18 = math.rsqrt %17 : vector<1x1280xf32>
    %19 = vector.broadcast %18 : vector<1x1280xf32> to vector<8x1280xf32>
    %20 = arith.mulf %15, %19 : vector<8x1280xf32>
    %c0_7 = arith.constant 0 : index
    %c0_8 = arith.constant 0 : index
    %21 = vector.load %arg2[%c0_7, %c0_8] : memref<1280x256xf32, #tpu.memory_space<vmem>>, vector<1280x256xf32>
    %cst_9 = arith.constant dense<0.000000e+00> : vector<8x256xf32>
    %22 = tpu.matmul %20, %21, %cst_9 {dimension_numbers = #tpu.dot_dimension_numbers<[1], [0], [0], [1], [0, 0, 1, 1], [], []>} : vector<8x1280xf32>, vector<1280x256xf32>, vector<8x256xf32> -> vector<8x256xf32>
    %c0_10 = arith.constant 0 : index
    %c0_11 = arith.constant 0 : index
    %23 = vector.load %arg3[%c0_10, %c0_11] : memref<8x256xf32, #tpu.memory_space<vmem>>, vector<8x256xf32>
    tpu.vector_store %arg3[%c0_10, %c0_11], %22 {strides = array<i32>} : memref<8x256xf32, #tpu.memory_space<vmem>>, vector<8x256xf32>,
    return
  }
}

</mosaic_0001>

<bundles_post_ra>
// kernel: _fused_forward.1
= control target key start
LH: loop header
LB: loop body
LE: loop exit
PB: predicated region body
PF: predicated region fallthrough
CT: control target
= control target key end

     0   :  { %8 = vsyncpa [#allocation3], 0  ;;  %s1703_s0 = inlined_call_operand.hbm [shape: f32[8,768], index: 0, kind: input, shape index: {}]   ;;  %s1704_s1 = inlined_call_operand.hbm [shape: f32[8,512], index: 1, kind: input, shape index: {}]   ;;  %s1705_s2 = inlined_call_operand.hbm [shape: f32[1280,256], index: 2, kind: input, shape index: {}]   ;;  %s1706_s3 = inlined_call_operand.vmem [shape: f32[8,256], index: 3, kind: output, shape index: {}]  }
   0x1   :  { %9 = vsyncpa [#allocation5], 0  ;;  %s1378_s12 = smov [#allocation4]   ;;  %s1379_s14 = smov [#allocation2]  }
   0x2   :  { %s26_s13 = sshll.u32 %s1378_s12, 4  ;;  %s16_s15 = sshll.u32 %s1379_s14, 4  ;;  %s27_s13 = int_to_ptr.vmem [resolvable:$true] %s26_s13  ;;  %s17_s15 = int_to_ptr.vmem [resolvable:$true] %s16_s15 }
   0x3   :  { %s1308_s18 = scalar_lea.hbm %s1704_s1, 512 }
   0x4   :  { %p1309_p0 = scmp.ne.s32.totalorder %s1704_s1, %s1308_s18  ;;  %p1312_p1 = scmp.lt.u32.totalorder %s1308_s18, %s1704_s1 }
   0x6   :  { %p1314_p2 = pnand %p1312_p1, %p1309_p0 }
   0x8   :  { %1317 = shalt.err (!%p1314_p2)
}
   0x9   :  { %s1318_s23 = scalar_lea.vmem %s27_s13, 512  ;;  %p1323_p4 = scmp.lt.s32.totalorder %s27_s13, %s27_s13 }
   0xa   :  { %p1319_p3 = scmp.ne.s32.totalorder %s27_s13, %s1318_s23  ;;  %p1324_p5 = scmp.lt.s32.totalorder %s1318_s23, %s1318_s23 }
   0xc   :  { %p1325_p6 = por %p1324_p5, %p1323_p4 }
   0xe   :  { %p1326_p7 = pnand %p1325_p6, %p1319_p3 }
  0x10   :  { %1329 = shalt.err (!%p1326_p7)
}
  0x11   :  { %29 = dma.hbm_to_vmem [thread:$0]  %s1704_s1, 512, %s27_s13, [#allocation5]  }
  0x12   :  { %s1330_s28 = scalar_lea.hbm %s1703_s0, 768 }
  0x13   :  { %p1331_p8 = scmp.ne.s32.totalorder %s1703_s0, %s1330_s28  ;;  %p1334_p9 = scmp.lt.u32.totalorder %s1330_s28, %s1703_s0 }
  0x15   :  { %p1336_p10 = pnand %p1334_p9, %p1331_p8 }
  0x17   :  { %1339 = shalt.err (!%p1336_p10)
}
  0x18   :  { %s1340_s6 = scalar_lea.vmem %s17_s15, 768  ;;  %p1345_p12 = scmp.lt.s32.totalorder %s17_s15, %s17_s15 }
  0x19   :  { %p1341_p11 = scmp.ne.s32.totalorder %s17_s15, %s1340_s6  ;;  %p1346_p13 = scmp.lt.s32.totalorder %s1340_s6, %s1340_s6 }
  0x1b   :  { %p1347_p0 = por %p1346_p13, %p1345_p12 }
  0x1d   :  { %p1348_p1 = pnand %p1347_p0, %p1341_p11 }
  0x1f   :  { %1351 = shalt.err (!%p1348_p1)
}
  0x20   :  { %19 = dma.hbm_to_vmem [thread:$0]  %s1703_s0, 768, %s17_s15, [#allocation3]  }
  0x21   :  { %s1380_s8 = smov [#allocation6]   ;;  %s1352_s12 = scalar_lea.hbm %s1705_s2, 40960 }
  0x22   :  { %s35_s9 = sshll.u32 %s1380_s8, 4  ;;  %p1353_p2 = scmp.ne.s32.totalorder %s1705_s2, %s1352_s12  ;;  %s36_s9 = int_to_ptr.vmem [resolvable:$true] %s35_s9 }
  0x23   :  { %p1356_p3 = scmp.lt.u32.totalorder %s1352_s12, %s1705_s2 }
  0x25   :  { %p1358_p4 = pnand %p1356_p3, %p1353_p2 }
  0x27   :  { %1361 = shalt.err (!%p1358_p4)
}
  0x28   :  { %s1362_s18 = scalar_lea.vmem %s36_s9, 40960  ;;  %p1367_p6 = scmp.lt.s32.totalorder %s36_s9, %s36_s9 }
  0x29   :  { %p1363_p5 = scmp.ne.s32.totalorder %s36_s9, %s1362_s18  ;;  %p1368_p7 = scmp.lt.s32.totalorder %s1362_s18, %s1362_s18 }
  0x2b   :  { %p1369_p8 = por %p1368_p7, %p1367_p6 }
  0x2d   :  { %p1370_p9 = pnand %p1369_p8, %p1363_p5 }
  0x2f   :  { %1373 = shalt.err (!%p1370_p9)
}
  0x30   :  { %s1381_s0 = smov 256   ;;  %s1382_s15 = smov 16  }
  0x31   :  { %41 = dma.hbm_to_vmem [thread:$0]  %s1705_s2, 40960, %s36_s9, [#allocation5], %s1381_s0, %s1381_s0, %s1382_s15  }
  0x32   :  { %1374 = dma.done.wait [#allocation3], 768  }
  0x33   :  { %1375 = vsyncadd [#allocation3], 4294966528 }
  0x34   :  { %1376 = dma.done.wait [#allocation5], 41472  }
  0x35   :  { %1377 = vsyncadd [#allocation5], 4294925824  ;;  %v273_v0 = vld [vmem:[#allocation6 + $0x8] sm:$0xff]  ;;  %v275_v1 = vld [vmem:[#allocation6 + $0x18] sm:$0xff] }
  0x36   :  { %v401_v2 = vld [vmem:[#allocation6 + $0x408] sm:$0xff]  ;;  %v955_v3 = vpack.c.bf16 %v275_v1, %v273_v0  ;;  %v403_v4 = vld [vmem:[#allocation6 + $0x418] sm:$0xff]  ;;  %v272_v5 = vld [vmem:[#allocation6] sm:$0xff] }
  0x37   :  { %v274_v6 = vld [vmem:[#allocation6 + $0x10] sm:$0xff]  ;;  %v1083_v7 = vpack.c.bf16 %v403_v4, %v401_v2  ;;  %v400_v9 = vld [vmem:[#allocation6 + $0x400] sm:$0xff]  ;;  %v277_v11 = vld [vmem:[#allocation6 + $0x28] sm:$0xff] }
  0x38   :  { %v957_v8 = vpack.c.bf16 %v274_v6, %v272_v5  ;;  %v402_v10 = vld [vmem:[#allocation6 + $0x410] sm:$0xff]  ;;  %956 = vmatprep.subr.bf16.mxu1 %v955_v3  ;;  %v279_v13 = vld [vmem:[#allocation6 + $0x38] sm:$0xff]  ;;  %v405_v14 = vld [vmem:[#allocation6 + $0x428] sm:$0xff] }
  0x39   :  { %v1085_v12 = vpack.c.bf16 %v402_v10, %v400_v9  ;;  %v407_v15 = vld [vmem:[#allocation6 + $0x438] sm:$0xff]  ;;  %1084 = vmatprep.subr.bf16.mxu0 %v1083_v7  ;;  %v959_v16 = vpack.c.bf16 %v279_v13, %v277_v11  ;;  %v276_v18 = vld [vmem:[#allocation6 + $0x20] sm:$0xff]  ;;  %v278_v19 = vld [vmem:[#allocation6 + $0x30] sm:$0xff] }
  0x3a   :  { %958 = vmatpush1.bf16.msra.mxu1 %v957_v8  ;;  %v1087_v17 = vpack.c.bf16 %v407_v15, %v405_v14  ;;  %v404_v20 = vld [vmem:[#allocation6 + $0x420] sm:$0xff]  ;;  %v961_v21 = vpack.c.bf16 %v278_v19, %v276_v18  ;;  %v406_v22 = vld [vmem:[#allocation6 + $0x430] sm:$0xff]  ;;  %v281_v23 = vld [vmem:[#allocation6 + $0x48] sm:$0xff] }
  0x3b   :  { %1086 = vmatpush1.bf16.msra.mxu0 %v1085_v12  ;;  %v283_v24 = vld [vmem:[#allocation6 + $0x58] sm:$0xff]  ;;  %960 = vmatprep.subr.bf16.mxu1 %v959_v16  ;;  %v1089_v25 = vpack.c.bf16 %v406_v22, %v404_v20  ;;  %v409_v27 = vld [vmem:[#allocation6 + $0x448] sm:$0xff]  ;;  %v280_v29 = vld [vmem:[#allocation6 + $0x40] sm:$0xff] }
  0x3c   :  { %1088 = vmatprep.subr.bf16.mxu0 %v1087_v17  ;;  %v963_v26 = vpack.c.bf16 %v283_v24, %v281_v23  ;;  %v411_v28 = vld [vmem:[#allocation6 + $0x458] sm:$0xff]  ;;  %v282_v31 = vld [vmem:[#allocation6 + $0x50] sm:$0xff]  ;;  %v408_v32 = vld [vmem:[#allocation6 + $0x440] sm:$0xff] }
  0x3d   :  { %v1091_v30 = vpack.c.bf16 %v411_v28, %v409_v27  ;;  %v410_v33 = vld [vmem:[#allocation6 + $0x450] sm:$0xff]  ;;  %v965_v34 = vpack.c.bf16 %v282_v31, %v280_v29  ;;  %v285_v35 = vld [vmem:[#allocation6 + $0x68] sm:$0xff]  ;;  %v287_v36 = vld [vmem:[#allocation6 + $0x78] sm:$0xff] }
  0x3e   :  { %962 = vmatpush1.bf16.msra.mxu1 %v961_v21  ;;  %v413_v37 = vld [vmem:[#allocation6 + $0x468] sm:$0xff]  ;;  %v1093_v38 = vpack.c.bf16 %v410_v33, %v408_v32  ;;  %v967_v39 = vpack.c.bf16 %v287_v36, %v285_v35  ;;  %v415_v40 = vld [vmem:[#allocation6 + $0x478] sm:$0xff]  ;;  %v284_v41 = vld [vmem:[#allocation6 + $0x60] sm:$0xff] }
  0x3f   :  { %1090 = vmatpush1.bf16.msra.mxu0 %v1089_v25  ;;  %964 = vmatprep.subr.bf16.mxu1 %v963_v26  ;;  %v286_v42 = vld [vmem:[#allocation6 + $0x70] sm:$0xff]  ;;  %v1095_v43 = vpack.c.bf16 %v415_v40, %v413_v37  ;;  %v412_v44 = vld [vmem:[#allocation6 + $0x460] sm:$0xff]  ;;  %v289_v46 = vld [vmem:[#allocation6 + $0x88] sm:$0xff] }
  0x40   :  { %1092 = vmatprep.subr.bf16.mxu0 %v1091_v30  ;;  %v414_v45 = vld [vmem:[#allocation6 + $0x470] sm:$0xff]  ;;  %v291_v47 = vld [vmem:[#allocation6 + $0x98] sm:$0xff]  ;;  %v417_v48 = vld [vmem:[#allocation6 + $0x488] sm:$0xff]  ;;  %v969_v50 = vpack.c.bf16 %v286_v42, %v284_v41 }
  0x41   :  { %v419_v49 = vld [vmem:[#allocation6 + $0x498] sm:$0xff]  ;;  %v1097_v51 = vpack.c.bf16 %v414_v45, %v412_v44  ;;  %v971_v52 = vpack.c.bf16 %v291_v47, %v289_v46  ;;  %v288_v53 = vld [vmem:[#allocation6 + $0x80] sm:$0xff]  ;;  %v290_v54 = vld [vmem:[#allocation6 + $0x90] sm:$0xff] }
  0x42   :  { %966 = vmatpush1.bf16.msra.mxu1 %v965_v34  ;;  %v416_v55 = vld [vmem:[#allocation6 + $0x480] sm:$0xff]  ;;  %v1099_v56 = vpack.c.bf16 %v419_v49, %v417_v48  ;;  %v418_v57 = vld [vmem:[#allocation6 + $0x490] sm:$0xff]  ;;  %v293_v58 = vld [vmem:[#allocation6 + $0xa8] sm:$0xff]  ;;  %v973_v62 = vpack.c.bf16 %v290_v54, %v288_v53 }
  0x43   :  { %1094 = vmatpush1.bf16.msra.mxu0 %v1093_v38  ;;  %968 = vmatprep.subr.bf16.mxu1 %v967_v39  ;;  %v295_v59 = vld [vmem:[#allocation6 + $0xb8] sm:$0xff]  ;;  %v421_v60 = vld [vmem:[#allocation6 + $0x4a8] sm:$0xff]  ;;  %v1101_v63 = vpack.c.bf16 %v418_v57, %v416_v55  ;;  %v292_v1 = vld [vmem:[#allocation6 + $0xa0] sm:$0xff] }
  0x44   :  { %1096 = vmatprep.subr.bf16.mxu0 %v1095_v43  ;;  %v423_v61 = vld [vmem:[#allocation6 + $0x4b8] sm:$0xff]  ;;  %v975_v0 = vpack.c.bf16 %v295_v59, %v293_v58  ;;  %v294_v2 = vld [vmem:[#allocation6 + $0xb0] sm:$0xff]  ;;  %v420_v3 = vld [vmem:[#allocation6 + $0x4a0] sm:$0xff] }
  0x45   :  { %v1103_v4 = vpack.c.bf16 %v423_v61, %v421_v60  ;;  %v422_v5 = vld [vmem:[#allocation6 + $0x4b0] sm:$0xff]  ;;  %v297_v6 = vld [vmem:[#allocation6 + $0xc8] sm:$0xff]  ;;  %v299_v7 = vld [vmem:[#allocation6 + $0xd8] sm:$0xff]  ;;  %v977_v10 = vpack.c.bf16 %v294_v2, %v292_v1 }
  0x46   :  { %970 = vmatpush1.bf16.msra.mxu1 %v969_v50  ;;  %v425_v8 = vld [vmem:[#allocation6 + $0x4c8] sm:$0xff]  ;;  %v427_v9 = vld [vmem:[#allocation6 + $0x4d8] sm:$0xff]  ;;  %v1105_v11 = vpack.c.bf16 %v422_v5, %v420_v3  ;;  %v979_v12 = vpack.c.bf16 %v299_v7, %v297_v6  ;;  %v296_v13 = vld [vmem:[#allocation6 + $0xc0] sm:$0xff] }
  0x47   :  { %1098 = vmatpush1.bf16.msra.mxu0 %v1097_v51  ;;  %972 = vmatprep.subr.bf16.mxu1 %v971_v52  ;;  %v298_v14 = vld [vmem:[#allocation6 + $0xd0] sm:$0xff]  ;;  %v424_v15 = vld [vmem:[#allocation6 + $0x4c0] sm:$0xff]  ;;  %v1107_v16 = vpack.c.bf16 %v427_v9, %v425_v8  ;;  %v301_v18 = vld [vmem:[#allocation6 + $0xe8] sm:$0xff] }
  0x48   :  { %1100 = vmatprep.subr.bf16.mxu0 %v1099_v56  ;;  %v426_v17 = vld [vmem:[#allocation6 + $0x4d0] sm:$0xff]  ;;  %v303_v19 = vld [vmem:[#allocation6 + $0xf8] sm:$0xff]  ;;  %v429_v20 = vld [vmem:[#allocation6 + $0x4e8] sm:$0xff]  ;;  %v981_v22 = vpack.c.bf16 %v298_v14, %v296_v13 }
  0x49   :  { %v431_v21 = vld [vmem:[#allocation6 + $0x4f8] sm:$0xff]  ;;  %v1109_v23 = vpack.c.bf16 %v426_v17, %v424_v15  ;;  %v983_v24 = vpack.c.bf16 %v303_v19, %v301_v18  ;;  %v300_v25 = vld [vmem:[#allocation6 + $0xe0] sm:$0xff]  ;;  %v302_v26 = vld [vmem:[#allocation6 + $0xf0] sm:$0xff] }
  0x4a   :  { %974 = vmatpush1.bf16.msra.mxu1 %v973_v62  ;;  %v428_v27 = vld [vmem:[#allocation6 + $0x4e0] sm:$0xff]  ;;  %v1111_v28 = vpack.c.bf16 %v431_v21, %v429_v20  ;;  %v430_v29 = vld [vmem:[#allocation6 + $0x4f0] sm:$0xff]  ;;  %v305_v30 = vld [vmem:[#allocation6 + $0x108] sm:$0xff]  ;;  %v985_v34 = vpack.c.bf16 %v302_v26, %v300_v25 }
  0x4b   :  { %1102 = vmatpush1.bf16.msra.mxu0 %v1101_v63  ;;  %976 = vmatprep.subr.bf16.mxu1 %v975_v0  ;;  %v307_v31 = vld [vmem:[#allocation6 + $0x118] sm:$0xff]  ;;  %v433_v32 = vld [vmem:[#allocation6 + $0x508] sm:$0xff]  ;;  %v1113_v35 = vpack.c.bf16 %v430_v29, %v428_v27  ;;  %v304_v37 = vld [vmem:[#allocation6 + $0x100] sm:$0xff] }
  0x4c   :  { %1104 = vmatprep.subr.bf16.mxu0 %v1103_v4  ;;  %v435_v33 = vld [vmem:[#allocation6 + $0x518] sm:$0xff]  ;;  %v987_v36 = vpack.c.bf16 %v307_v31, %v305_v30  ;;  %v306_v38 = vld [vmem:[#allocation6 + $0x110] sm:$0xff]  ;;  %v432_v39 = vld [vmem:[#allocation6 + $0x500] sm:$0xff] }
  0x4d   :  { %v1115_v40 = vpack.c.bf16 %v435_v33, %v433_v32  ;;  %v434_v41 = vld [vmem:[#allocation6 + $0x510] sm:$0xff]  ;;  %v309_v42 = vld [vmem:[#allocation6 + $0x128] sm:$0xff]  ;;  %v311_v43 = vld [vmem:[#allocation6 + $0x138] sm:$0xff]  ;;  %v989_v47 = vpack.c.bf16 %v306_v38, %v304_v37 }
  0x4e   :  { %978 = vmatpush1.bf16.msra.mxu1 %v977_v10  ;;  %v437_v44 = vld [vmem:[#allocation6 + $0x528] sm:$0xff]  ;;  %v439_v45 = vld [vmem:[#allocation6 + $0x538] sm:$0xff]  ;;  %v308_v46 = vld [vmem:[#allocation6 + $0x120] sm:$0xff]  ;;  %v1117_v51 = vpack.c.bf16 %v434_v41, %v432_v39  ;;  %v991_v52 = vpack.c.bf16 %v311_v43, %v309_v42 }
  0x4f   :  { %1106 = vmatpush1.bf16.msra.mxu0 %v1105_v11  ;;  %980 = vmatprep.subr.bf16.mxu1 %v979_v12  ;;  %v310_v48 = vld [vmem:[#allocation6 + $0x130] sm:$0xff]  ;;  %v436_v49 = vld [vmem:[#allocation6 + $0x520] sm:$0xff]  ;;  %v313_v53 = vld [vmem:[#allocation6 + $0x148] sm:$0xff]  ;;  %v1119_v56 = vpack.c.bf16 %v439_v45, %v437_v44 }
  0x50   :  { %1108 = vmatprep.subr.bf16.mxu0 %v1107_v16  ;;  %v438_v50 = vld [vmem:[#allocation6 + $0x530] sm:$0xff]  ;;  %v315_v54 = vld [vmem:[#allocation6 + $0x158] sm:$0xff]  ;;  %v441_v55 = vld [vmem:[#allocation6 + $0x548] sm:$0xff]  ;;  %v993_v4 = vpack.c.bf16 %v310_v48, %v308_v46 }
  0x51   :  { %v443_v57 = vld [vmem:[#allocation6 + $0x558] sm:$0xff]  ;;  %v1439_v58 = vld [vmem:[#allocation6 + $0x140] sm:$0xff]  ;;  %v1441_v59 = vld [vmem:[#allocation6 + $0x150] sm:$0xff]  ;;  %v1121_v11 = vpack.c.bf16 %v438_v50, %v436_v49  ;;  %v995_v12 = vpack.c.bf16 %v315_v54, %v313_v53 }
  0x52   :  { %982 = vmatpush1.bf16.msra.mxu1 %v981_v22  ;;  %v1443_v60 = vld [vmem:[#allocation6 + $0x540] sm:$0xff]  ;;  %v1445_v61 = vld [vmem:[#allocation6 + $0x550] sm:$0xff]  ;;  %v1447_v62 = vld [vmem:[#allocation6 + $0x168] sm:$0xff]  ;;  %v1123_v17 = vpack.c.bf16 %v443_v57, %v441_v55  ;;  %v997_v21 = vpack.c.bf16 %v1441_v59, %v1439_v58 }
  0x53   :  { %1110 = vmatpush1.bf16.msra.mxu0 %v1109_v23  ;;  %984 = vmatprep.subr.bf16.mxu1 %v983_v24  ;;  %v1449_v63 = vld [vmem:[#allocation6 + $0x178] sm:$0xff]  ;;  %v1451_v0 = vld [vmem:[#allocation6 + $0x568] sm:$0xff]  ;;  %v1455_v2 = vld [vmem:[#allocation6 + $0x160] sm:$0xff]  ;;  %v1125_v25 = vpack.c.bf16 %v1445_v61, %v1443_v60 }
  0x54   :  { %1112 = vmatprep.subr.bf16.mxu0 %v1111_v28  ;;  %v1453_v1 = vld [vmem:[#allocation6 + $0x578] sm:$0xff]  ;;  %v1457_v3 = vld [vmem:[#allocation6 + $0x170] sm:$0xff]  ;;  %v1459_v5 = vld [vmem:[#allocation6 + $0x560] sm:$0xff]  ;;  %v999_v26 = vpack.c.bf16 %v1449_v63, %v1447_v62 }
  0x55   :  { %v1461_v6 = vld [vmem:[#allocation6 + $0x570] sm:$0xff]  ;;  %v1463_v7 = vld [vmem:[#allocation6 + $0x188] sm:$0xff]  ;;  %v1465_v8 = vld [vmem:[#allocation6 + $0x198] sm:$0xff]  ;;  %v1127_v27 = vpack.c.bf16 %v1453_v1, %v1451_v0  ;;  %v1001_v28 = vpack.c.bf16 %v1457_v3, %v1455_v2 }
  0x56   :  { %986 = vmatpush1.bf16.msra.mxu1 %v985_v34  ;;  %v1467_v9 = vld [vmem:[#allocation6 + $0x588] sm:$0xff]  ;;  %v1469_v10 = vld [vmem:[#allocation6 + $0x598] sm:$0xff]  ;;  %v1471_v13 = vld [vmem:[#allocation6 + $0x180] sm:$0xff]  ;;  %v1129_v32 = vpack.c.bf16 %v1461_v6, %v1459_v5  ;;  %v1003_v33 = vpack.c.bf16 %v1465_v8, %v1463_v7 }
  0x57   :  { %1114 = vmatpush1.bf16.msra.mxu0 %v1113_v35  ;;  %988 = vmatprep.subr.bf16.mxu1 %v987_v36  ;;  %v1473_v14 = vld [vmem:[#allocation6 + $0x190] sm:$0xff]  ;;  %v1475_v15 = vld [vmem:[#allocation6 + $0x580] sm:$0xff]  ;;  %v1479_v18 = vld [vmem:[#allocation6 + $0x1a8] sm:$0xff]  ;;  %v1131_v34 = vpack.c.bf16 %v1469_v10, %v1467_v9 }
  0x58   :  { %1116 = vmatprep.subr.bf16.mxu0 %v1115_v40  ;;  %v1477_v16 = vld [vmem:[#allocation6 + $0x590] sm:$0xff]  ;;  %v1481_v19 = vld [vmem:[#allocation6 + $0x1b8] sm:$0xff]  ;;  %v1483_v20 = vld [vmem:[#allocation6 + $0x5a8] sm:$0xff]  ;;  %v1005_v38 = vpack.c.bf16 %v1473_v14, %v1471_v13 }
  0x59   :  { %v1487_v22 = vld [vmem:[#allocation6 + $0x5b8] sm:$0xff]  ;;  %v1489_v23 = vld [vmem:[#allocation6 + $0x1a0] sm:$0xff]  ;;  %v1491_v24 = vld [vmem:[#allocation6 + $0x1b0] sm:$0xff]  ;;  %v1133_v39 = vpack.c.bf16 %v1477_v16, %v1475_v15  ;;  %v1007_v40 = vpack.c.bf16 %v1481_v19, %v1479_v18 }
  0x5a   :  { %990 = vmatpush1.bf16.msra.mxu1 %v989_v47  ;;  %v1501_v29 = vld [vmem:[#allocation6 + $0x5a0] sm:$0xff]  ;;  %v1503_v30 = vld [vmem:[#allocation6 + $0x5b0] sm:$0xff]  ;;  %v1505_v31 = vld [vmem:[#allocation6 + $0x1c8] sm:$0xff]  ;;  %v1135_v41 = vpack.c.bf16 %v1487_v22, %v1483_v20  ;;  %v1009_v45 = vpack.c.bf16 %v1491_v24, %v1489_v23 }
  0x5b   :  { %1118 = vmatpush1.bf16.msra.mxu0 %v1117_v51  ;;  %992 = vmatprep.subr.bf16.mxu1 %v991_v52  ;;  %v1513_v35 = vld [vmem:[#allocation6 + $0x1d8] sm:$0xff]  ;;  %v1515_v36 = vld [vmem:[#allocation6 + $0x5c8] sm:$0xff]  ;;  %v1527_v42 = vld [vmem:[#allocation6 + $0x1c0] sm:$0xff]  ;;  %v1137_v46 = vpack.c.bf16 %v1503_v30, %v1501_v29 }
  0x5c   :  { %1120 = vmatprep.subr.bf16.mxu0 %v1119_v56  ;;  %v1517_v37 = vld [vmem:[#allocation6 + $0x5d8] sm:$0xff]  ;;  %v1529_v43 = vld [vmem:[#allocation6 + $0x1d0] sm:$0xff]  ;;  %v1537_v47 = vld [vmem:[#allocation6 + $0x5c0] sm:$0xff]  ;;  %v1011_v52 = vpack.c.bf16 %v1513_v35, %v1505_v31 }
  0x5d   :  { %v1531_v44 = vld [vmem:[#allocation2 + $0x8] sm:$0xff]  ;;  %v1539_v48 = vld [vmem:[#allocation6 + $0x5d0] sm:$0xff]  ;;  %v1139_v53 = vpack.c.bf16 %v1517_v37, %v1515_v36  ;;  %v1013_v57 = vpack.c.bf16 %v1529_v43, %v1527_v42  ;;  %v337_v30 = vld [vmem:[#allocation6 + $0x208] sm:$0xff] }
  0x5e   :  { %994 = vmatpush1.bf16.msra.mxu1 %v993_v4  ;;  %v67_v49 = vrot.slane %v1531_v44, 4  ;;  %v133_v50 = vmul.f32 %v1531_v44, %v1531_v44  ;;  %v1544_v51 = vld [vmem:[#allocation2 + $0x28] sm:$0xff]  ;;  %v1553_v56 = vld [vmem:[#allocation2] sm:$0xff]  ;;  %v1141_v62 = vpack.c.bf16 %v1539_v48, %v1537_v47 }
  0x5f   :  { %1122 = vmatpush1.bf16.msra.mxu0 %v1121_v11  ;;  %996 = vmatprep.subr.bf16.mxu1 %v995_v12  ;;  %v91_v54 = vrot.slane %v1544_v51, 4  ;;  %v137_v55 = vmul.f32 %v1544_v51, %v1544_v51  ;;  %v61_v60 = vrot.slane %v1553_v56, 4  ;;  %v1559_v61 = vld [vmem:[#allocation2 + $0x20] sm:$0xff]  ;;  %v132_v1 = vmul.f32 %v1553_v56, %v1553_v56 }
  0x60   :  { %1124 = vmatprep.subr.bf16.mxu0 %v1123_v17  ;;  %v68_v58 = vadd.f32 %v67_v49, %v1531_v44  ;;  %v148_v59 = vrot.slane %v133_v50, 4  ;;  %v85_v5 = vrot.slane %v1559_v61, 4  ;;  %v136_v9 = vmul.f32 %v1559_v61, %v1559_v61  ;;  %v462_v29 = vld [vmem:[#allocation6 + $0x5f0] sm:$0xff] }
  0x61   :  { %v92_v63 = vadd.f32 %v91_v54, %v1544_v51  ;;  %v172_v0 = vrot.slane %v137_v55, 4  ;;  %v62_v4 = vadd.f32 %v61_v60, %v1553_v56  ;;  %v142_v8 = vrot.slane %v132_v1, 4 }
  0x62   :  { %998 = vmatpush1.bf16.msra.mxu1 %v997_v21  ;;  %v69_v2 = vrot.slane %v68_v58, 2  ;;  %v149_v3 = vadd.f32 %v148_v59, %v133_v50  ;;  %v86_v13 = vadd.f32 %v85_v5, %v1559_v61  ;;  %v166_v17 = vrot.slane %v136_v9, 4  ;;  %v332_v5 = vld [vmem:[#allocation6 + $0x1e0] sm:$0xff] }
  0x63   :  { %1126 = vmatpush1.bf16.msra.mxu0 %v1125_v25  ;;  %1000 = vmatprep.subr.bf16.mxu1 %v999_v26  ;;  %v93_v6 = vrot.slane %v92_v63, 2  ;;  %v173_v7 = vadd.f32 %v172_v0, %v137_v55  ;;  %v63_v12 = vrot.slane %v62_v4, 2  ;;  %v143_v16 = vadd.f32 %v142_v8, %v132_v1  ;;  %v335_v55 = vld [vmem:[#allocation6 + $0x1f8] sm:$0xff] }
  0x64   :  { %1128 = vmatprep.subr.bf16.mxu0 %v1127_v27  ;;  %v70_v10 = vadd.f32 %v69_v2, %v68_v58  ;;  %v150_v11 = vrot.slane %v149_v3, 2  ;;  %v87_v25 = vrot.slane %v86_v13, 2  ;;  %v463_v0 = vld [vmem:[#allocation6 + $0x5f8] sm:$0xff] }
  0x65   :  { %v94_v14 = vadd.f32 %v93_v6, %v92_v63  ;;  %v174_v15 = vrot.slane %v173_v7, 2  ;;  %v64_v21 = vadd.f32 %v63_v12, %v62_v4  ;;  %v461_v63 = vld [vmem:[#allocation6 + $0x5e8] sm:$0xff]  ;;  %v334_v6 = vld [vmem:[#allocation6 + $0x1f0] sm:$0xff] }
  0x66   :  { %1002 = vmatpush1.bf16.msra.mxu1 %v1001_v28  ;;  %v71_v18 = vrot.slane %v70_v10, 1  ;;  %v151_v19 = vadd.f32 %v150_v11, %v149_v3  ;;  %v144_v28 = vrot.slane %v143_v16, 2  ;;  %v88_v54 = vadd.f32 %v87_v25, %v86_v13  ;;  %v467_v11 = vld [vmem:[#allocation6 + $0x618] sm:$0xff] }
  0x67   :  { %1130 = vmatpush1.bf16.msra.mxu0 %v1129_v32  ;;  %1004 = vmatprep.subr.bf16.mxu1 %v1003_v33  ;;  %v95_v26 = vrot.slane %v94_v14, 1  ;;  %v175_v27 = vadd.f32 %v174_v15, %v173_v7  ;;  %v167_v32 = vadd.f32 %v166_v17, %v136_v9  ;;  %v65_v50 = vrot.slane %v64_v21, 1  ;;  %v460_v7 = vld [vmem:[#allocation6 + $0x5e0] sm:$0xff] }
  0x68   :  { %1132 = vmatprep.subr.bf16.mxu0 %v1131_v34  ;;  %v72_v33 = vadd.f32 %v71_v18, %v70_v10  ;;  %v152_v49 = vrot.slane %v151_v19, 1  ;;  %v333_v34 = vld [vmem:[#allocation6 + $0x1e8] sm:$0xff]  ;;  %v145_v60 = vadd.f32 %v144_v28, %v143_v16  ;;  %v89_v2 = vrot.slane %v88_v54, 1 }
  0x69   :  { %v96_v58 = vadd.f32 %v95_v26, %v94_v14  ;;  %v176_v59 = vrot.slane %v175_v27, 1  ;;  %v1015_v4 = vpack.c.bf16 %v335_v55, %v333_v34  ;;  %v465_v10 = vld [vmem:[#allocation6 + $0x608] sm:$0xff]  ;;  %v1017_v36 = vpack.c.bf16 %v334_v6, %v332_v5  ;;  %v343_v55 = vld [vmem:[#allocation6 + $0x238] sm:$0xff] }
  0x6a   :  { %1006 = vmatpush1.bf16.msra.mxu1 %v1005_v38  ;;  %v168_v38 = vrot.slane %v167_v32, 2  ;;  %v1574_v1 = vmul.f32 0.125, %v72_v33  ;;  %v146_v22 = vrot.slane %v145_v60, 1  ;;  %v90_v13 = vadd.f32 %v89_v2, %v88_v54  ;;  %v336_v33 = vld [vmem:[#allocation6 + $0x200] sm:$0xff]  ;;  %v341_v34 = vld [vmem:[#allocation6 + $0x228] sm:$0xff] }
  0x6b   :  { %1134 = vmatpush1.bf16.msra.mxu0 %v1133_v39  ;;  %1008 = vmatprep.subr.bf16.mxu1 %v1007_v40  ;;  %v153_v39 = vadd.f32 %v152_v49, %v151_v19  ;;  %v66_v40 = vadd.f32 %v65_v50, %v64_v21  ;;  %v1579_v3 = vmul.f32 0.125, %v96_v58  ;;  %v177_v20 = vadd.f32 %v176_v59, %v175_v27  ;;  %v338_v49 = vld [vmem:[#allocation6 + $0x210] sm:$0xff]  ;;  %v345_v2 = vld [vmem:[#allocation6 + $0x248] sm:$0xff] }
  0x6c   :  { %1136 = vmatprep.subr.bf16.mxu0 %v1135_v41  ;;  %v169_v41 = vadd.f32 %v168_v38, %v167_v32  ;;  %v213_v23 = vmul.f32 %v1574_v1, %v1574_v1  ;;  %v147_v35 = vadd.f32 %v146_v22, %v145_v60  ;;  %v1145_v15 = vpack.c.bf16 %v462_v29, %v460_v7  ;;  %v464_v38 = vld [vmem:[#allocation6 + $0x600] sm:$0xff]  ;;  %v470_v22 = vld [vmem:[#allocation6 + $0x630] sm:$0xff]  ;;  %v473_v6 = vld [vmem:[#allocation6 + $0x648] sm:$0xff] }
  0x6d   :  { %v203_v8 = vmul.f32 0.125, %v153_v39  ;;  %v122_v24 = vmul.f32 0.125, %v66_v40  ;;  %v207_v9 = vmul.f32 0.125, %v177_v20  ;;  %v217_v31 = vmul.f32 %v1579_v3, %v1579_v3  ;;  %v340_v39 = vld [vmem:[#allocation6 + $0x220] sm:$0xff]  ;;  %v471_v40 = vld [vmem:[#allocation6 + $0x638] sm:$0xff] }
  0x6e   :  { %1010 = vmatpush1.bf16.msra.mxu1 %v1009_v45  ;;  %v1143_v45 = vpack.c.bf16 %v463_v0, %v461_v63  ;;  %v170_v14 = vrot.slane %v169_v41, 1  ;;  %v126_v18 = vmul.f32 0.125, %v90_v13  ;;  %v1147_v21 = vpack.c.bf16 %v467_v11, %v465_v10  ;;  %v466_v63 = vld [vmem:[#allocation6 + $0x610] sm:$0xff]  ;;  %v468_v20 = vld [vmem:[#allocation6 + $0x620] sm:$0xff]  ;;  %v475_v7 = vld [vmem:[#allocation6 + $0x658] sm:$0xff] }
  0x6f   :  { %1138 = vmatpush1.bf16.msra.mxu0 %v1137_v46  ;;  %1012 = vmatprep.subr.bf16.mxu1 %v1011_v52  ;;  %v339_v46 = vld [vmem:[#allocation6 + $0x218] sm:$0xff]  ;;  %v223_v52 = vsub.f32 %v203_v8, %v213_v23  ;;  %v212_v12 = vmul.f32 %v122_v24, %v122_v24  ;;  %v227_v37 = vsub.f32 %v207_v9, %v217_v31  ;;  %v344_v8 = vld [vmem:[#allocation6 + $0x240] sm:$0xff]  ;;  %v346_v23 = vld [vmem:[#allocation6 + $0x250] sm:$0xff] }
  0x70   :  { %1140 = vmatprep.subr.bf16.mxu0 %v1139_v53  ;;  %v202_v53 = vmul.f32 0.125, %v147_v35  ;;  %v1019_v17 = vpack.c.bf16 %v339_v46, %v337_v30  ;;  %v171_v26 = vadd.f32 %v170_v14, %v169_v41  ;;  %v216_v42 = vmul.f32 %v126_v18, %v126_v18  ;;  %v472_v29 = vld [vmem:[#allocation6 + $0x640] sm:$0xff]  ;;  %v474_v30 = vld [vmem:[#allocation6 + $0x650] sm:$0xff]  ;;  %v349_v46 = vld [vmem:[#allocation6 + $0x268] sm:$0xff] }
  0x71   :  { %v243_v16 = vadd.f32 1e-05, %v223_v52  ;;  %v247_v19 = vadd.f32 1e-05, %v227_v37  ;;  %v237_v27 = vsub.f32 %v1544_v51, %v1579_v3  ;;  %v232_v32 = vsub.f32 %v1553_v56, %v122_v24  ;;  %v342_v56 = vld [vmem:[#allocation6 + $0x230] sm:$0xff]  ;;  %v347_v3 = vld [vmem:[#allocation6 + $0x258] sm:$0xff] }
  0x72   :  { %1014 = vmatpush1.bf16.msra.mxu1 %v1013_v57  ;;  %v222_v25 = vsub.f32 %v202_v53, %v212_v12  ;;  %v206_v57 = vmul.f32 0.125, %v171_v26  ;;  %v1021_v60 = vpack.c.bf16 %v338_v49, %v336_v33  ;;  %v236_v0 = vsub.f32 %v1559_v61, %v126_v18  ;;  %v351_v9 = vld [vmem:[#allocation6 + $0x278] sm:$0xff]  ;;  %v1606_v31 = vld [vmem:[#allocation6 + $0x668] sm:$0xff]  ;;  %v348_v52 = vld [vmem:[#allocation6 + $0x260] sm:$0xff] }
  0x73   :  { %1142 = vmatpush1.bf16.msra.mxu0 %v1141_v62  ;;  %1016 = vmatprep.subr.bf16.mxu1 %v1015_v4  ;;  %1288 = vrsqrt.f32 %v243_v16  ;;  %v233_v62 = vsub.f32 %v1531_v44, %v1574_v1  ;;  %v1023_v51 = vpack.c.bf16 %v343_v55, %v341_v34  ;;  %v469_v1 = vld [vmem:[#allocation6 + $0x628] sm:$0xff]  ;;  %v1149_v4 = vpack.c.bf16 %v466_v63, %v464_v38  ;;  %v1608_v35 = vld [vmem:[#allocation6 + $0x678] sm:$0xff]  ;;  %v350_v10 = vld [vmem:[#allocation6 + $0x270] sm:$0xff] }
  0x74   :  { %1144 = vmatprep.subr.bf16.mxu0 %v1143_v45  ;;  %1290 = vrsqrt.f32 %v247_v19  ;;  %v242_v43 = vadd.f32 1e-05, %v222_v25  ;;  %v226_v47 = vsub.f32 %v206_v57, %v216_v42  ;;  %v1025_v5 = vpack.c.bf16 %v342_v56, %v340_v39  ;;  %v1610_v11 = vld [vmem:[#allocation6 + $0x660] sm:$0xff]  ;;  %v353_v37 = vld [vmem:[#allocation6 + $0x288] sm:$0xff]  ;;  %v355_v53 = vld [vmem:[#allocation6 + $0x298] sm:$0xff] }
  0x75   :  { %v1151_v61 = vpack.c.bf16 %v471_v40, %v469_v1  ;;  %v1027_v45 = vpack.c.bf16 %v347_v3, %v345_v2  ;;  %v1153_v12 = vpack.c.bf16 %v470_v22, %v468_v20  ;;  %v1029_v13 = vpack.c.bf16 %v346_v23, %v344_v8  ;;  %v1616_v19 = vld [vmem:[#allocation6 + $0x688] sm:$0xff]  ;;  %v359_v55 = vld [vmem:[#allocation6 + $0x2b8] sm:$0xff]  ;;  %v480_v1 = vld [vmem:[#allocation6 + $0x680] sm:$0xff] }
  0x76   :  { %1018 = vmatpush1.bf16.msra.mxu1 %v1017_v36  ;;  %1292 = vrsqrt.f32 %v242_v43  ;;  %v246_v48 = vadd.f32 1e-05, %v226_v47  ;;  %v1612_v36 = vld [vmem:[#allocation6 + $0x670] sm:$0xff]  ;;  %v1155_v14 = vpack.c.bf16 %v475_v7, %v473_v6  ;;  %v1157_v16 = vpack.c.bf16 %v474_v30, %v472_v29  ;;  %v1620_v25 = vld [vmem:[#allocation2 + $0x18] sm:$0xff]  ;;  %v1627_v47 = vld [vmem:[#allocation2 + $0x10] sm:$0xff] }
  0x77   :  { %1146 = vmatpush1.bf16.msra.mxu0 %v1145_v15  ;;  %1020 = vmatprep.subr.bf16.mxu1 %v1019_v17  ;;  %v1031_v15 = vpack.c.bf16 %v351_v9, %v349_v46  ;;  %v1159_v17 = vpack.c.bf16 %v1608_v35, %v1606_v31  ;;  %v1033_v18 = vpack.c.bf16 %v350_v10, %v348_v52  ;;  %v79_v43 = vrot.slane %v1620_v25, 4  ;;  %v357_v34 = vld [vmem:[#allocation6 + $0x2a8] sm:$0xff]  ;;  %v482_v39 = vld [vmem:[#allocation6 + $0x690] sm:$0xff]  ;;  %v487_v22 = vld [vmem:[#allocation6 + $0x6b8] sm:$0xff] }
  0x78   :  { %1148 = vmatprep.subr.bf16.mxu0 %v1147_v21  ;;  %1294 = vrsqrt.f32 %v246_v48  ;;  %v1618_v21 = vld [vmem:[#allocation6 + $0x698] sm:$0xff]  ;;  %v1161_v26 = vpack.c.bf16 %v1612_v36, %v1610_v11  ;;  %v1035_v42 = vpack.c.bf16 %v355_v53, %v353_v37  ;;  %v135_v57 = vmul.f32 %v1620_v25, %v1620_v25  ;;  %v1629_v48 = vld [vmem:[#allocation4 + $0x8] sm:$0xff]  ;;  %v484_v10 = vld [vmem:[#allocation6 + $0x6a0] sm:$0xff] }
  0x79   :  { %v103_v33 = vrot.slane %v1629_v48, 4  ;;  %v139_v49 = vmul.f32 %v1629_v48, %v1629_v48  ;;  %v1645_v56 = vld [vmem:[#allocation6 + $0x6a8] sm:$0xff]  ;;  %v1039_v20 = vpack.c.bf16 %v359_v55, %v357_v34  ;;  %v363_v23 = vld [vmem:[#allocation6 + $0x2d8] sm:$0xff]  ;;  %v1165_v30 = vpack.c.bf16 %v482_v39, %v480_v1  ;;  %v486_v11 = vld [vmem:[#allocation6 + $0x6b0] sm:$0xff] }
  0x7a   :  { %v361_v8 = vld [vmem:[#allocation6 + $0x2c8] sm:$0xff]  ;;  %v1167_v35 = vpack.c.bf16 %v487_v22, %v1645_v56  ;;  %v491_v53 = vld [vmem:[#allocation6 + $0x6d8] sm:$0xff]  ;;  %v488_v34 = vld [vmem:[#allocation6 + $0x6c0] sm:$0xff] }
  0x7b   :  { %v1043_v37 = vpack.c.bf16 %v363_v23, %v361_v8  ;;  %v490_v55 = vld [vmem:[#allocation6 + $0x6d0] sm:$0xff]  ;;  %v369_v39 = vld [vmem:[#allocation6 + $0x308] sm:$0xff]  ;;  %v371_v56 = vld [vmem:[#allocation6 + $0x318] sm:$0xff] }
  0x7c   :  { %v366_v1 = vld [vmem:[#allocation6 + $0x2f0] sm:$0xff] }
  0x7d   :  { %v1289_v28 = vpop.eup %1288 }
  0x7e   :  { %v1291_v50 = vpop.eup %1290  ;;  %v263_v54 = vmul.f32 %v1289_v28, %v233_v62  ;;  %v352_v62 = vld [vmem:[#allocation6 + $0x280] sm:$0xff]  ;;  %v73_v28 = vrot.slane %v1627_v47, 4 }
  0x7f   :  { %v267_v58 = vmul.f32 %v1291_v50, %v237_v27  ;;  %v354_v27 = vld [vmem:[#allocation6 + $0x290] sm:$0xff]  ;;  %v1637_v50 = vld [vmem:[#allocation4] sm:$0xff] }
  0x80   :  { %v1293_v59 = vpop.eup %1292  ;;  %656 = vmatprep.mubr.f32.mxu1 %v263_v54  ;;  %v1163_v54 = vpack.c.bf16 %v1618_v21, %v1616_v19  ;;  %v74_v38 = vadd.f32 %v73_v28, %v1627_v47  ;;  %v138_v3 = vmul.f32 %v1637_v50, %v1637_v50  ;;  %v365_v19 = vld [vmem:[#allocation6 + $0x2e8] sm:$0xff]  ;;  %v367_v21 = vld [vmem:[#allocation6 + $0x2f8] sm:$0xff] }
  0x81   :  { %798 = vmatprep.mubr.f32.mxu0 %v267_v58  ;;  %v262_v44 = vmul.f32 %v1293_v59, %v232_v32  ;;  %v134_v32 = vmul.f32 %v1627_v47, %v1627_v47  ;;  %v80_v58 = vadd.f32 %v79_v43, %v1620_v25  ;;  %v160_v59 = vrot.slane %v135_v57, 4 }
  0x82   :  { %v1295_v41 = vpop.eup %1294  ;;  %v178_v31 = vrot.slane %v138_v3, 4 }
  0x83   :  { %657 = vmatmul.mubr.f32.vlgmr.msra.gmra.mrb[0].mxu1 %v262_v44  ;;  %v266_v24 = vmul.f32 %v1295_v41, %v236_v0  ;;  %v154_v63 = vrot.slane %v134_v32, 4  ;;  %v104_v44 = vadd.f32 %v103_v33, %v1629_v48  ;;  %v184_v0 = vrot.slane %v139_v49, 4  ;;  %v356_v41 = vld [vmem:[#allocation6 + $0x2a0] sm:$0xff] }
  0x84   :  { %1022 = vmatpush1.bf16.msra.mxu1 %v1021_v60  ;;  %v97_v60 = vrot.slane %v1637_v50, 4  ;;  %v81_v40 = vrot.slane %v80_v58, 2  ;;  %v161_v2 = vadd.f32 %v160_v59, %v135_v57 }
  0x85   :  { %1024 = vmatprep.subr.bf16.mxu1 %v1023_v51  ;;  %799 = vmatmul.mubr.f32.vlgmr.msra.gmra.mrb[0].mxu0 %v266_v24  ;;  %v1037_v51 = vpack.c.bf16 %v354_v27, %v352_v62  ;;  %v185_v6 = vadd.f32 %v184_v0, %v139_v49  ;;  %v155_v29 = vadd.f32 %v154_v63, %v134_v32  ;;  %v495_v63 = vld [vmem:[#allocation6 + $0x6f8] sm:$0xff] }
  0x86   :  { %1150 = vmatpush1.bf16.msra.mxu0 %v1149_v4  ;;  %v358_v4 = vld [vmem:[#allocation6 + $0x2b0] sm:$0xff]  ;;  %v98_v7 = vadd.f32 %v97_v60, %v1637_v50  ;;  %v82_v24 = vadd.f32 %v81_v40, %v80_v58  ;;  %v1169_v27 = vpack.c.bf16 %v486_v11, %v484_v10  ;;  %v493_v60 = vld [vmem:[#allocation6 + $0x6e8] sm:$0xff] }
  0x87   :  { %1152 = vmatprep.subr.bf16.mxu0 %v1151_v61  ;;  %v162_v61 = vrot.slane %v161_v2, 2  ;;  %v186_v9 = vrot.slane %v185_v6, 2  ;;  %v1041_v52 = vpack.c.bf16 %v358_v4, %v356_v41  ;;  %v156_v62 = vrot.slane %v155_v29, 2 }
  0x88   :  { %1026 = vmatpush1.bf16.msra.mxu1 %v1025_v5  ;;  %v105_v5 = vrot.slane %v104_v44, 2  ;;  %v1173_v4 = vpack.c.bf16 %v490_v55, %v488_v34  ;;  %v1175_v23 = vpack.c.bf16 %v495_v63, %v493_v60  ;;  %v505_v34 = vld [vmem:[#allocation6 + $0x748] sm:$0xff]  ;;  %v507_v60 = vld [vmem:[#allocation6 + $0x758] sm:$0xff]  ;;  %v376_v63 = vld [vmem:[#allocation6 + $0x340] sm:$0xff] }
  0x89   :  { %1028 = vmatprep.subr.bf16.mxu1 %v1027_v45  ;;  %v75_v45 = vrot.slane %v74_v38, 2  ;;  %v163_v36 = vadd.f32 %v162_v61, %v161_v2  ;;  %v1051_v61 = vpack.c.bf16 %v371_v56, %v369_v39 }
  0x8a   :  { %1154 = vmatpush1.bf16.msra.mxu0 %v1153_v12  ;;  %v106_v46 = vadd.f32 %v105_v5, %v104_v44  ;;  %v1651_v12 = vld [vmem:[#allocation6 + $0x6c8] sm:$0xff]  ;;  %v364_v44 = vld [vmem:[#allocation6 + $0x2e0] sm:$0xff] }
  0x8b   :  { %1156 = vmatprep.subr.bf16.mxu0 %v1155_v14  ;;  %v360_v14 = vld [vmem:[#allocation6 + $0x2c0] sm:$0xff]  ;;  %v164_v43 = vrot.slane %v163_v36, 1  ;;  %v76_v57 = vadd.f32 %v75_v45, %v74_v38  ;;  %v1171_v33 = vpack.c.bf16 %v491_v53, %v1651_v12  ;;  %v497_v45 = vld [vmem:[#allocation6 + $0x708] sm:$0xff] }
  0x8c   :  { %1030 = vmatpush1.bf16.msra.mxu1 %v1029_v13  ;;  %v83_v13 = vrot.slane %v82_v24, 1  ;;  %v492_v5 = vld [vmem:[#allocation6 + $0x6e0] sm:$0xff] }
  0x8d   :  { %1032 = vmatprep.subr.bf16.mxu1 %v1031_v15  ;;  %v362_v15 = vld [vmem:[#allocation6 + $0x2d0] sm:$0xff]  ;;  %v165_v59 = vadd.f32 %v164_v43, %v163_v36 }
  0x8e   :  { %1158 = vmatpush1.bf16.msra.mxu0 %v1157_v16  ;;  %v107_v16 = vrot.slane %v106_v46, 1  ;;  %v1045_v49 = vpack.c.bf16 %v362_v15, %v360_v14 }
  0x8f   :  { %1160 = vmatprep.subr.bf16.mxu0 %v1159_v17  ;;  %v187_v17 = vadd.f32 %v186_v9, %v185_v6  ;;  %v205_v40 = vmul.f32 0.125, %v165_v59  ;;  %v494_v6 = vld [vmem:[#allocation6 + $0x6f0] sm:$0xff] }
  0x90   :  { %1034 = vmatpush1.bf16.msra.mxu1 %v1033_v18  ;;  %v99_v18 = vrot.slane %v98_v7, 2  ;;  %v108_v28 = vadd.f32 %v107_v16, %v106_v46  ;;  %v368_v46 = vld [vmem:[#allocation6 + $0x300] sm:$0xff]  ;;  %v1177_v36 = vpack.c.bf16 %v494_v6, %v492_v5  ;;  %v498_v16 = vld [vmem:[#allocation6 + $0x710] sm:$0xff] }
  0x91   :  { %1036 = vmatprep.subr.bf16.mxu1 %v1035_v42  ;;  %v84_v42 = vadd.f32 %v83_v13, %v82_v24  ;;  %v188_v32 = vrot.slane %v187_v17, 1  ;;  %v1049_v24 = vpack.c.bf16 %v366_v1, %v364_v44  ;;  %v378_v44 = vld [vmem:[#allocation6 + $0x350] sm:$0xff]  ;;  %v504_v5 = vld [vmem:[#allocation6 + $0x740] sm:$0xff] }
  0x92   :  { %1162 = vmatpush1.bf16.msra.mxu0 %v1161_v26  ;;  %v179_v26 = vadd.f32 %v178_v31, %v138_v3  ;;  %v1656_v38 = vmul.f32 0.125, %v108_v28  ;;  %v77_v3 = vrot.slane %v76_v57, 1  ;;  %v373_v31 = vld [vmem:[#allocation6 + $0x328] sm:$0xff]  ;;  %v506_v6 = vld [vmem:[#allocation6 + $0x750] sm:$0xff] }
  0x93   :  { %1164 = vmatprep.subr.bf16.mxu0 %v1163_v54  ;;  %v1654_v58 = vmul.f32 0.125, %v84_v42  ;;  %v1047_v54 = vpack.c.bf16 %v367_v21, %v365_v19  ;;  %v189_v0 = vadd.f32 %v188_v32, %v187_v17  ;;  %v503_v19 = vld [vmem:[#allocation6 + $0x738] sm:$0xff]  ;;  %v372_v21 = vld [vmem:[#allocation6 + $0x320] sm:$0xff]  ;;  %v374_v42 = vld [vmem:[#allocation6 + $0x330] sm:$0xff] }
  0x94   :  { %1038 = vmatpush1.bf16.msra.mxu1 %v1037_v51  ;;  %v100_v51 = vadd.f32 %v99_v18, %v98_v7  ;;  %v180_v41 = vrot.slane %v179_v26, 2  ;;  %v219_v7 = vmul.f32 %v1656_v38, %v1656_v38  ;;  %v78_v10 = vadd.f32 %v77_v3, %v76_v57  ;;  %v501_v18 = vld [vmem:[#allocation6 + $0x728] sm:$0xff]  ;;  %v379_v32 = vld [vmem:[#allocation6 + $0x358] sm:$0xff] }
  0x95   :  { %1040 = vmatprep.subr.bf16.mxu1 %v1039_v20  ;;  %v215_v2 = vmul.f32 %v1654_v58, %v1654_v58  ;;  %v157_v20 = vadd.f32 %v156_v62, %v155_v29  ;;  %v209_v22 = vmul.f32 0.125, %v189_v0  ;;  %v370_v29 = vld [vmem:[#allocation6 + $0x310] sm:$0xff]  ;;  %v377_v28 = vld [vmem:[#allocation6 + $0x348] sm:$0xff]  ;;  %v1183_v59 = vpack.c.bf16 %v503_v19, %v501_v18  ;;  %v515_v18 = vld [vmem:[#allocation6 + $0x798] sm:$0xff] }
  0x96   :  { %1166 = vmatpush1.bf16.msra.mxu0 %v1165_v30  ;;  %v499_v30 = vld [vmem:[#allocation6 + $0x718] sm:$0xff]  ;;  %v101_v9 = vrot.slane %v100_v51, 1  ;;  %v181_v13 = vadd.f32 %v180_v41, %v179_v26  ;;  %v1053_v15 = vpack.c.bf16 %v370_v29, %v368_v46  ;;  %v1662_v43 = vmul.f32 0.125, %v78_v10  ;;  %v385_v29 = vld [vmem:[#allocation6 + $0x388] sm:$0xff]  ;;  %v384_v19 = vld [vmem:[#allocation6 + $0x380] sm:$0xff] }
  0x97   :  { %1168 = vmatprep.subr.bf16.mxu0 %v1167_v35  ;;  %v225_v8 = vsub.f32 %v205_v40, %v215_v2  ;;  %v375_v35 = vld [vmem:[#allocation6 + $0x338] sm:$0xff]  ;;  %v158_v11 = vrot.slane %v157_v20, 1  ;;  %v229_v12 = vsub.f32 %v209_v22, %v219_v7  ;;  %v1179_v14 = vpack.c.bf16 %v499_v30, %v497_v45  ;;  %v381_v40 = vld [vmem:[#allocation6 + $0x368] sm:$0xff]  ;;  %v382_v7 = vld [vmem:[#allocation6 + $0x370] sm:$0xff] }
  0x98   :  { %1042 = vmatpush1.bf16.msra.mxu1 %v1041_v52  ;;  %v1055_v17 = vpack.c.bf16 %v375_v35, %v373_v31  ;;  %v102_v62 = vadd.f32 %v101_v9, %v100_v51  ;;  %v182_v26 = vrot.slane %v181_v13, 1  ;;  %v1059_v51 = vpack.c.bf16 %v379_v32, %v377_v28  ;;  %v383_v2 = vld [vmem:[#allocation6 + $0x378] sm:$0xff] }
  0x99   :  { %1044 = vmatprep.subr.bf16.mxu1 %v1043_v37  ;;  %v245_v52 = vadd.f32 1e-05, %v225_v8  ;;  %v496_v37 = vld [vmem:[#allocation6 + $0x700] sm:$0xff]  ;;  %v249_v53 = vadd.f32 1e-05, %v229_v12  ;;  %v159_v57 = vadd.f32 %v158_v11, %v157_v20  ;;  %v214_v39 = vmul.f32 %v1662_v43, %v1662_v43  ;;  %v511_v9 = vld [vmem:[#allocation6 + $0x778] sm:$0xff] }
  0x9a   :  { %1170 = vmatpush1.bf16.msra.mxu0 %v1169_v27  ;;  %v1664_v27 = vld [vmem:[#allocation4 + $0x18] sm:$0xff]  ;;  %v1181_v55 = vpack.c.bf16 %v498_v16, %v496_v37  ;;  %v1669_v56 = vmul.f32 0.125, %v102_v62  ;;  %v235_v3 = vsub.f32 %v1620_v25, %v1654_v58  ;;  %v183_v20 = vadd.f32 %v182_v26, %v181_v13  ;;  %v380_v8 = vld [vmem:[#allocation6 + $0x360] sm:$0xff]  ;;  %v509_v58 = vld [vmem:[#allocation6 + $0x768] sm:$0xff] }
  0x9b   :  { %1172 = vmatprep.subr.bf16.mxu0 %v1171_v33  ;;  %1296 = vrsqrt.f32 %v245_v52  ;;  %v500_v33 = vld [vmem:[#allocation6 + $0x720] sm:$0xff]  ;;  %v115_v0 = vrot.slane %v1664_v27, 4  ;;  %v204_v1 = vmul.f32 0.125, %v159_v57  ;;  %v1187_v41 = vpack.c.bf16 %v507_v60, %v505_v34  ;;  %v387_v31 = vld [vmem:[#allocation6 + $0x398] sm:$0xff]  ;;  %v513_v37 = vld [vmem:[#allocation6 + $0x788] sm:$0xff] }
  0x9c   :  { %1046 = vmatpush1.bf16.msra.mxu1 %v1045_v49  ;;  %1298 = vrsqrt.f32 %v249_v53  ;;  %v502_v49 = vld [vmem:[#allocation6 + $0x730] sm:$0xff]  ;;  %v1063_v25 = vpack.c.bf16 %v383_v2, %v381_v40  ;;  %v218_v46 = vmul.f32 %v1669_v56, %v1669_v56  ;;  %v208_v52 = vmul.f32 0.125, %v183_v20  ;;  %v508_v13 = vld [vmem:[#allocation6 + $0x760] sm:$0xff]  ;;  %v391_v57 = vld [vmem:[#allocation6 + $0x3b8] sm:$0xff] }
  0x9d   :  { %1048 = vmatprep.subr.bf16.mxu1 %v1047_v54  ;;  %v1057_v54 = vpack.c.bf16 %v374_v42, %v372_v21  ;;  %v1185_v22 = vpack.c.bf16 %v502_v49, %v500_v33  ;;  %v224_v30 = vsub.f32 %v204_v1, %v214_v39  ;;  %v1189_v11 = vpack.c.bf16 %v506_v6, %v504_v5  ;;  %v386_v21 = vld [vmem:[#allocation6 + $0x390] sm:$0xff]  ;;  %v389_v42 = vld [vmem:[#allocation6 + $0x3a8] sm:$0xff]  ;;  %v512_v34 = vld [vmem:[#allocation6 + $0x780] sm:$0xff] }
  0x9e   :  { %1174 = vmatpush1.bf16.msra.mxu0 %v1173_v4  ;;  %v1061_v4 = vpack.c.bf16 %v378_v44, %v376_v63  ;;  %v1065_v12 = vpack.c.bf16 %v382_v7, %v380_v8  ;;  %v1191_v16 = vpack.c.bf16 %v511_v9, %v509_v58  ;;  %v228_v28 = vsub.f32 %v208_v52, %v218_v46  ;;  %v390_v1 = vld [vmem:[#allocation6 + $0x3b0] sm:$0xff]  ;;  %v393_v39 = vld [vmem:[#allocation6 + $0x3c8] sm:$0xff]  ;;  %v395_v40 = vld [vmem:[#allocation6 + $0x3d8] sm:$0xff] }
  0x9f   :  { %1176 = vmatprep.subr.bf16.mxu0 %v1175_v23  ;;  %v239_v23 = vsub.f32 %v1629_v48, %v1656_v38  ;;  %v244_v62 = vadd.f32 1e-05, %v224_v30  ;;  %v1069_v49 = vpack.c.bf16 %v386_v21, %v384_v19  ;;  %v1195_v63 = vpack.c.bf16 %v515_v18, %v513_v37  ;;  %v518_v5 = vld [vmem:[#allocation6 + $0x7b0] sm:$0xff]  ;;  %v397_v58 = vld [vmem:[#allocation6 + $0x3e8] sm:$0xff]  ;;  %v399_v30 = vld [vmem:[#allocation6 + $0x3f8] sm:$0xff] }
  0xa0   :  { %1050 = vmatpush1.bf16.msra.mxu1 %v1049_v24  ;;  %v116_v24 = vadd.f32 %v115_v0, %v1664_v27  ;;  %v1071_v44 = vpack.c.bf16 %v391_v57, %v389_v42  ;;  %v519_v0 = vld [vmem:[#allocation6 + $0x7b8] sm:$0xff]  ;;  %v248_v2 = vadd.f32 1e-05, %v228_v28  ;;  %v234_v37 = vsub.f32 %v1627_v47, %v1662_v43  ;;  %v526_v18 = vld [vmem:[#allocation6 + $0x7f0] sm:$0xff]  ;;  %v529_v19 = vld [vmem:[#allocation6 + $0x808] sm:$0xff] }
  0xa1   :  { %1052 = vmatprep.subr.bf16.mxu1 %v1051_v61  ;;  %v141_v61 = vmul.f32 %v1664_v27, %v1664_v27  ;;  %1300 = vrsqrt.f32 %v244_v62  ;;  %v531_v21 = vld [vmem:[#allocation6 + $0x818] sm:$0xff]  ;;  %v238_v57 = vsub.f32 %v1637_v50, %v1669_v56  ;;  %v528_v28 = vld [vmem:[#allocation6 + $0x800] sm:$0xff]  ;;  %v534_v56 = vld [vmem:[#allocation6 + $0x830] sm:$0xff] }
  0xa2   :  { %1178 = vmatpush1.bf16.msra.mxu0 %v1177_v36  ;;  %v117_v48 = vrot.slane %v116_v24, 2  ;;  %v510_v36 = vld [vmem:[#allocation6 + $0x770] sm:$0xff]  ;;  %1302 = vrsqrt.f32 %v248_v2  ;;  %v1211_v43 = vpack.c.bf16 %v531_v21, %v529_v19  ;;  %v532_v50 = vld [vmem:[#allocation6 + $0x820] sm:$0xff]  ;;  %v561_v19 = vld [vmem:[#allocation6 + $0x908] sm:$0xff] }
  0xa3   :  { %1180 = vmatprep.subr.bf16.mxu0 %v1179_v14  ;;  %v196_v38 = vrot.slane %v141_v61, 4  ;;  %v1193_v33 = vpack.c.bf16 %v510_v36, %v508_v13  ;;  %v527_v13 = vld [vmem:[#allocation6 + $0x7f8] sm:$0xff]  ;;  %v1690_v2 = vld [vmem:[#allocation4 + $0x10] sm:$0xff] }
  0xa4   :  { %1054 = vmatpush1.bf16.msra.mxu1 %v1053_v15  ;;  %v118_v14 = vadd.f32 %v117_v48, %v116_v24  ;;  %v521_v24 = vld [vmem:[#allocation6 + $0x7c8] sm:$0xff]  ;;  %v522_v48 = vld [vmem:[#allocation6 + $0x7d0] sm:$0xff]  ;;  %v563_v21 = vld [vmem:[#allocation6 + $0x918] sm:$0xff] }
  0xa5   :  { %1056 = vmatprep.subr.bf16.mxu1 %v1055_v17  ;;  %v1297_v45 = vpop.eup %1296  ;;  %v197_v15 = vadd.f32 %v196_v38, %v141_v61  ;;  %v1067_v17 = vpack.c.bf16 %v387_v31, %v385_v29  ;;  %v392_v61 = vld [vmem:[#allocation6 + $0x3c0] sm:$0xff]  ;;  %v1079_v38 = vpack.c.bf16 %v399_v30, %v397_v58 }
  0xa6   :  { %1182 = vmatpush1.bf16.msra.mxu0 %v1181_v55  ;;  %v265_v35 = vmul.f32 %v1297_v45, %v235_v3  ;;  %v1299_v10 = vpop.eup %1298  ;;  %v119_v32 = vrot.slane %v118_v14, 1  ;;  %v514_v55 = vld [vmem:[#allocation6 + $0x790] sm:$0xff]  ;;  %v520_v31 = vld [vmem:[#allocation6 + $0x7c0] sm:$0xff] }
  0xa7   :  { %1184 = vmatprep.subr.bf16.mxu0 %v1183_v59  ;;  %v269_v53 = vmul.f32 %v1299_v10, %v239_v23  ;;  %v198_v26 = vrot.slane %v197_v15, 2  ;;  %v517_v59 = vld [vmem:[#allocation6 + $0x7a8] sm:$0xff]  ;;  %v1075_v23 = vpack.c.bf16 %v395_v40, %v393_v39  ;;  %v394_v45 = vld [vmem:[#allocation6 + $0x3d0] sm:$0xff]  ;;  %v396_v10 = vld [vmem:[#allocation6 + $0x3e0] sm:$0xff] }
  0xa8   :  { %1058 = vmatpush1.bf16.msra.mxu1 %v1057_v54  ;;  %727 = vmatprep.mubr.f32.mxu1 %v265_v35  ;;  %v120_v54 = vadd.f32 %v119_v32, %v118_v14  ;;  %v1199_v7 = vpack.c.bf16 %v519_v0, %v517_v59  ;;  %v1077_v29 = vpack.c.bf16 %v394_v45, %v392_v61  ;;  %v530_v32 = vld [vmem:[#allocation6 + $0x810] sm:$0xff]  ;;  %v541_v40 = vld [vmem:[#allocation6 + $0x868] sm:$0xff] }
  0xa9   :  { %1060 = vmatprep.subr.bf16.mxu1 %v1059_v51  ;;  %869 = vmatprep.mubr.f32.mxu0 %v269_v53  ;;  %v199_v60 = vadd.f32 %v198_v26, %v197_v15  ;;  %v388_v51 = vld [vmem:[#allocation6 + $0x3a0] sm:$0xff]  ;;  %v1205_v14 = vpack.c.bf16 %v522_v48, %v520_v31  ;;  %v533_v26 = vld [vmem:[#allocation6 + $0x828] sm:$0xff]  ;;  %v1217_v0 = vpack.c.bf16 %v534_v56, %v532_v50  ;;  %v538_v39 = vld [vmem:[#allocation6 + $0x850] sm:$0xff] }
  0xaa   :  { %1186 = vmatpush1.bf16.msra.mxu0 %v1185_v22  ;;  %v1680_v3 = vmul.f32 0.125, %v120_v54  ;;  %v1197_v22 = vpack.c.bf16 %v514_v55, %v512_v34  ;;  %v1213_v55 = vpack.c.bf16 %v530_v32, %v528_v28  ;;  %v546_v61 = vld [vmem:[#allocation6 + $0x890] sm:$0xff]  ;;  %v549_v45 = vld [vmem:[#allocation6 + $0x8a8] sm:$0xff] }
  0xab   :  { %1188 = vmatprep.subr.bf16.mxu0 %v1187_v41  ;;  %v200_v20 = vrot.slane %v199_v60, 1  ;;  %v1073_v41 = vpack.c.bf16 %v390_v1, %v388_v51  ;;  %v1301_v53 = vpop.eup %1300  ;;  %v536_v1 = vld [vmem:[#allocation6 + $0x840] sm:$0xff]  ;;  %v550_v31 = vld [vmem:[#allocation6 + $0x8b0] sm:$0xff]  ;;  %v565_v32 = vld [vmem:[#allocation6 + $0x928] sm:$0xff] }
  0xac   :  { %1062 = vmatpush1.bf16.msra.mxu1 %v1061_v4  ;;  %v516_v4 = vld [vmem:[#allocation6 + $0x7a0] sm:$0xff]  ;;  %v221_v8 = vmul.f32 %v1680_v3, %v1680_v3  ;;  %v264_v42 = vmul.f32 %v1301_v53, %v234_v37  ;;  %v1303_v62 = vpop.eup %1302  ;;  %v241_v34 = vsub.f32 %v1664_v27, %v1680_v3  ;;  %v543_v27 = vld [vmem:[#allocation6 + $0x878] sm:$0xff]  ;;  %v1221_v3 = vpack.c.bf16 %v538_v39, %v536_v1  ;;  %v562_v28 = vld [vmem:[#allocation6 + $0x910] sm:$0xff] }
  0xad   :  { %1064 = vmatprep.subr.bf16.mxu1 %v1063_v25  ;;  %v201_v6 = vadd.f32 %v200_v20, %v199_v60  ;;  %v523_v25 = vld [vmem:[#allocation6 + $0x7d8] sm:$0xff]  ;;  %v1201_v9 = vpack.c.bf16 %v518_v5, %v516_v4  ;;  %v537_v60 = vld [vmem:[#allocation6 + $0x848] sm:$0xff]  ;;  %v1223_v20 = vpack.c.bf16 %v543_v27, %v541_v40  ;;  %v566_v50 = vld [vmem:[#allocation6 + $0x930] sm:$0xff] }
  0xae   :  { %1190 = vmatpush1.bf16.msra.mxu0 %v1189_v11  ;;  %v1203_v52 = vpack.c.bf16 %v523_v25, %v521_v24  ;;  %v398_v11 = vld [vmem:[#allocation6 + $0x3f0] sm:$0xff]  ;;  %v545_v4 = vld [vmem:[#allocation6 + $0x888] sm:$0xff]  ;;  %v547_v5 = vld [vmem:[#allocation6 + $0x898] sm:$0xff] }
  0xaf   :  { %1192 = vmatprep.subr.bf16.mxu0 %v1191_v16  ;;  %v211_v46 = vmul.f32 0.125, %v201_v6  ;;  %v1081_v15 = vpack.c.bf16 %v398_v11, %v396_v10  ;;  %v109_v6 = vrot.slane %v1690_v2, 4  ;;  %v544_v24 = vld [vmem:[#allocation6 + $0x880] sm:$0xff]  ;;  %v551_v25 = vld [vmem:[#allocation6 + $0x8b8] sm:$0xff]  ;;  %v569_v56 = vld [vmem:[#allocation6 + $0x948] sm:$0xff] }
  0xb0   :  { %1066 = vmatpush1.bf16.msra.mxu1 %v1065_v12  ;;  %v525_v12 = vld [vmem:[#allocation6 + $0x7e8] sm:$0xff]  ;;  %v559_v37 = vld [vmem:[#allocation6 + $0x8f8] sm:$0xff]  ;;  %v570_v1 = vld [vmem:[#allocation6 + $0x950] sm:$0xff] }
  0xb1   :  { %1068 = vmatprep.subr.bf16.mxu1 %v1067_v17  ;;  %v231_v35 = vsub.f32 %v211_v46, %v221_v8  ;;  %v1207_v16 = vpack.c.bf16 %v527_v13, %v525_v12  ;;  %v524_v17 = vld [vmem:[#allocation6 + $0x7e0] sm:$0xff]  ;;  %v140_v8 = vmul.f32 %v1690_v2, %v1690_v2  ;;  %v110_v58 = vadd.f32 %v109_v6, %v1690_v2  ;;  %v554_v13 = vld [vmem:[#allocation6 + $0x8d0] sm:$0xff]  ;;  %v573_v39 = vld [vmem:[#allocation6 + $0x968] sm:$0xff] }
  0xb2   :  { %1194 = vmatpush1.bf16.msra.mxu0 %v1193_v33  ;;  %v1209_v47 = vpack.c.bf16 %v526_v18, %v524_v17  ;;  %v535_v33 = vld [vmem:[#allocation6 + $0x838] sm:$0xff]  ;;  %v1229_v46 = vpack.c.bf16 %v546_v61, %v544_v24  ;;  %v552_v12 = vld [vmem:[#allocation6 + $0x8c0] sm:$0xff]  ;;  %v558_v18 = vld [vmem:[#allocation6 + $0x8f0] sm:$0xff] }
  0xb3   :  { %1196 = vmatprep.subr.bf16.mxu0 %v1195_v63  ;;  %v251_v36 = vadd.f32 1e-05, %v231_v35  ;;  %v1215_v59 = vpack.c.bf16 %v535_v33, %v533_v26  ;;  %v539_v63 = vld [vmem:[#allocation6 + $0x858] sm:$0xff]  ;;  %v190_v30 = vrot.slane %v140_v8, 4  ;;  %v553_v35 = vld [vmem:[#allocation6 + $0x8c8] sm:$0xff]  ;;  %v111_v48 = vrot.slane %v110_v58, 2 }
  0xb4   :  { %1070 = vmatpush1.bf16.msra.mxu1 %v1069_v49  ;;  %v268_v49 = vmul.f32 %v1303_v62, %v238_v57  ;;  %v1219_v51 = vpack.c.bf16 %v539_v63, %v537_v60  ;;  %v556_v17 = vld [vmem:[#allocation6 + $0x8e0] sm:$0xff]  ;;  %v567_v26 = vld [vmem:[#allocation6 + $0x938] sm:$0xff]  ;;  %v578_v61 = vld [vmem:[#allocation6 + $0x990] sm:$0xff] }
  0xb5   :  { %1072 = vmatprep.subr.bf16.mxu1 %v1071_v44  ;;  %1304 = vrsqrt.f32 %v251_v36  ;;  %v557_v36 = vld [vmem:[#allocation6 + $0x8e8] sm:$0xff]  ;;  %v112_v53 = vadd.f32 %v111_v48, %v110_v58  ;;  %v1241_v62 = vpack.c.bf16 %v558_v18, %v556_v17  ;;  %v575_v40 = vld [vmem:[#allocation6 + $0x978] sm:$0xff]  ;;  %v576_v24 = vld [vmem:[#allocation6 + $0x980] sm:$0xff] }
  0xb6   :  { %1198 = vmatpush1.bf16.msra.mxu0 %v1197_v22  ;;  %v540_v22 = vld [vmem:[#allocation6 + $0x860] sm:$0xff]  ;;  %v579_v6 = vld [vmem:[#allocation6 + $0x998] sm:$0xff] }
  0xb7   :  { %1200 = vmatprep.subr.bf16.mxu0 %v1199_v7 }
  0xb8   :  { %1074 = vmatpush1.bf16.msra.mxu1 %v1073_v41  ;;  %v542_v41 = vld [vmem:[#allocation6 + $0x870] sm:$0xff] }
  0xb9   :  { %1076 = vmatprep.subr.bf16.mxu1 %v1075_v23  ;;  %v1225_v7 = vpack.c.bf16 %v542_v41, %v540_v22  ;;  %v1227_v23 = vpack.c.bf16 %v547_v5, %v545_v4  ;;  %v1255_v22 = vpack.c.bf16 %v575_v40, %v573_v39  ;;  %v572_v41 = vld [vmem:[#allocation6 + $0x960] sm:$0xff]  ;;  %v574_v4 = vld [vmem:[#allocation6 + $0x970] sm:$0xff]  ;;  %v577_v5 = vld [vmem:[#allocation6 + $0x988] sm:$0xff] }
  0xba   :  { %1202 = vmatpush1.bf16.msra.mxu0 %v1201_v9  ;;  %v1231_v9 = vpack.c.bf16 %v551_v25, %v549_v45  ;;  %v581_v45 = vld [vmem:[#allocation6 + $0x9a8] sm:$0xff]  ;;  %v583_v25 = vld [vmem:[#allocation6 + $0x9b8] sm:$0xff] }
  0xbb   :  { %1204 = vmatprep.subr.bf16.mxu0 %v1203_v52  ;;  %v555_v52 = vld [vmem:[#allocation6 + $0x8d8] sm:$0xff] }
  0xbc   :  { %1078 = vmatpush1.bf16.msra.mxu1 %v1077_v29  ;;  %v548_v29 = vld [vmem:[#allocation6 + $0x8a0] sm:$0xff]  ;;  %v1235_v11 = vpack.c.bf16 %v555_v52, %v553_v35  ;;  %v587_v35 = vld [vmem:[#allocation6 + $0x9d8] sm:$0xff] }
  0xbd   :  { %1080 = vmatprep.subr.bf16.mxu1 %v1079_v38  ;;  %v191_v38 = vadd.f32 %v190_v30, %v140_v8  ;;  %v1233_v10 = vpack.c.bf16 %v550_v31, %v548_v29  ;;  %v1261_v30 = vpack.c.bf16 %v578_v61, %v576_v24  ;;  %v582_v29 = vld [vmem:[#allocation6 + $0x9b0] sm:$0xff]  ;;  %v585_v31 = vld [vmem:[#allocation6 + $0x9c8] sm:$0xff] }
  0xbe   :  { %1206 = vmatpush1.bf16.msra.mxu0 %v1205_v14  ;;  %v1267_v48 = vpack.c.bf16 %v587_v35, %v585_v31 }
  0xbf   :  { %1208 = vmatprep.subr.bf16.mxu0 %v1207_v16  ;;  %v1305_v54 = vpop.eup %1304  ;;  %v192_v14 = vrot.slane %v191_v38, 2  ;;  %v1239_v16 = vpack.c.bf16 %v559_v37, %v557_v36  ;;  %v588_v37 = vld [vmem:[#allocation6 + $0x9e0] sm:$0xff] }
  0xc0   :  { %1082 = vmatpush1.bf16.msra.mxu1 %v1081_v15  ;;  %v271_v44 = vmul.f32 %v1305_v54, %v241_v34  ;;  %v1237_v15 = vpack.c.bf16 %v554_v13, %v552_v12  ;;  %v571_v54 = vld [vmem:[#allocation6 + $0x958] sm:$0xff] }
  0xc1   :  { %v193_v57 = vadd.f32 %v192_v14, %v191_v38  ;;  %v584_v38 = vld [vmem:[#allocation6 + $0x9c0] sm:$0xff]  ;;  %v591_v12 = vld [vmem:[#allocation6 + $0x9f8] sm:$0xff] }
  0xc2   :  { %1210 = vmatpush1.bf16.msra.mxu0 %v1209_v47  ;;  %v1243_v47 = vpack.c.bf16 %v563_v21, %v561_v19 }
  0xc3   :  { %728 = vmatmul.mubr.f32.vlgmr.msra.gmra.mrb[0].mxu1 %v264_v42  ;;  %1212 = vmatprep.subr.bf16.mxu0 %v1211_v43  ;;  %v113_v42 = vrot.slane %v112_v53, 1  ;;  %v560_v43 = vld [vmem:[#allocation6 + $0x900] sm:$0xff] }
  0xc4   :  { %v1245_v34 = vpack.c.bf16 %v562_v28, %v560_v43 }
  0xc5   :  { %870 = vmatmul.mubr.f32.vlgmr.msra.gmra.mrb[0].mxu0 %v268_v49  ;;  %v114_v33 = vadd.f32 %v113_v42, %v112_v53  ;;  %v194_v49 = vrot.slane %v193_v57, 1  ;;  %v590_v53 = vld [vmem:[#allocation6 + $0x9f0] sm:$0xff] }
  0xc6   :  { %1214 = vmatpush1.bf16.msra.mxu0 %v1213_v55  ;;  %940 = vmatprep.mubr.f32.mxu0 %v271_v44  ;;  %v1247_v55 = vpack.c.bf16 %v567_v26, %v565_v32 }
  0xc7   :  { %1216 = vmatprep.subr.bf16.mxu0 %v1215_v59  ;;  %v564_v59 = vld [vmem:[#allocation6 + $0x920] sm:$0xff]  ;;  %v130_v60 = vmul.f32 0.125, %v114_v33  ;;  %v195_v63 = vadd.f32 %v194_v49, %v193_v57 }
  0xc8   :  { %v1249_v44 = vpack.c.bf16 %v566_v50, %v564_v59 }
  0xc9   :  { %v210_v27 = vmul.f32 0.125, %v195_v63  ;;  %v240_v14 = vsub.f32 %v1690_v2, %v130_v60 }
  0xca   :  { %1218 = vmatpush1.bf16.msra.mxu0 %v1217_v0  ;;  %v1251_v0 = vpack.c.bf16 %v571_v54, %v569_v56 }
  0xcb   :  { %1220 = vmatprep.subr.bf16.mxu0 %v1219_v51  ;;  %v568_v51 = vld [vmem:[#allocation6 + $0x940] sm:$0xff] }
  0xce   :  { %1222 = vmatpush1.bf16.msra.mxu0 %v1221_v3  ;;  %v220_v3 = vmul.f32 %v130_v60, %v130_v60 }
  0xcf   :  { %1224 = vmatprep.subr.bf16.mxu0 %v1223_v20  ;;  %v1253_v20 = vpack.c.bf16 %v570_v1, %v568_v51 }
  0xd0   :  { %v230_v8 = vsub.f32 %v210_v27, %v220_v3 }
  0xd2   :  { %1226 = vmatpush1.bf16.msra.mxu0 %v1225_v7  ;;  %v1257_v7 = vpack.c.bf16 %v574_v4, %v572_v41  ;;  %v250_v58 = vadd.f32 1e-05, %v230_v8 }
  0xd3   :  { %1228 = vmatprep.subr.bf16.mxu0 %v1227_v23  ;;  %v1259_v23 = vpack.c.bf16 %v579_v6, %v577_v5 }
  0xd4   :  { %1306 = vrsqrt.f32 %v250_v58 }
  0xd6   :  { %1230 = vmatpush1.bf16.msra.mxu0 %v1229_v46  ;;  %v1263_v46 = vpack.c.bf16 %v583_v25, %v581_v45 }
  0xd7   :  { %1232 = vmatprep.subr.bf16.mxu0 %v1231_v9  ;;  %v580_v9 = vld [vmem:[#allocation6 + $0x9a0] sm:$0xff] }
  0xd8   :  { %v1265_v52 = vpack.c.bf16 %v582_v29, %v580_v9 }
  0xda   :  { %1234 = vmatpush1.bf16.msra.mxu0 %v1233_v10  ;;  %v586_v10 = vld [vmem:[#allocation6 + $0x9d0] sm:$0xff] }
  0xdb   :  { %1236 = vmatprep.subr.bf16.mxu0 %v1235_v11  ;;  %v589_v11 = vld [vmem:[#allocation6 + $0x9e8] sm:$0xff]  ;;  %v1269_v13 = vpack.c.bf16 %v586_v10, %v584_v38 }
  0xdc   :  { %v1271_v36 = vpack.c.bf16 %v591_v12, %v589_v11 }
  0xde   :  { %1238 = vmatpush1.bf16.msra.mxu0 %v1237_v15  ;;  %v1307_v15 = vpop.eup %1306 }
  0xdf   :  { %1240 = vmatprep.subr.bf16.mxu0 %v1239_v16  ;;  %v1273_v16 = vpack.c.bf16 %v590_v53, %v588_v37  ;;  %v270_v17 = vmul.f32 %v1307_v15, %v240_v14 }
  0xe2   :  { %1242 = vmatpush1.bf16.msra.mxu0 %v1241_v62 }
  0xe3   :  { %1244 = vmatprep.subr.bf16.mxu0 %v1243_v47 }
  0xe6   :  { %1246 = vmatpush1.bf16.msra.mxu0 %v1245_v34 }
  0xe7   :  { %1248 = vmatprep.subr.bf16.mxu0 %v1247_v55 }
  0xea   :  { %1250 = vmatpush1.bf16.msra.mxu0 %v1249_v44 }
  0xeb   :  { %1252 = vmatprep.subr.bf16.mxu0 %v1251_v0 }
  0xee   :  { %1254 = vmatpush1.bf16.msra.mxu0 %v1253_v20 }
  0xef   :  { %1256 = vmatprep.subr.bf16.mxu0 %v1255_v22 }
  0xf2   :  { %1258 = vmatpush1.bf16.msra.mxu0 %v1257_v7 }
  0xf3   :  { %1260 = vmatprep.subr.bf16.mxu0 %v1259_v23 }
  0xf6   :  { %1262 = vmatpush1.bf16.msra.mxu0 %v1261_v30 }
  0xf7   :  { %1264 = vmatprep.subr.bf16.mxu0 %v1263_v46 }
  0xfa   :  { %1266 = vmatpush1.bf16.msra.mxu0 %v1265_v52 }
  0xfb   :  { %1268 = vmatprep.subr.bf16.mxu0 %v1267_v48 }
  0xfe   :  { %1270 = vmatpush1.bf16.msra.mxu0 %v1269_v13 }
  0xff   :  { %1272 = vmatprep.subr.bf16.mxu0 %v1271_v36 }
 0x102   :  { %1274 = vmatpush1.bf16.msra.mxu0 %v1273_v16 }
 0x105   :  { %941 = vmatmul.mubr.f32.vlgmr.msra.gmra.mrb[0].mxu0 %v270_v17 }
 0x196   :  { %v729_v18 = vpop.f32.mrb[0].mxu1 }
 0x197   :  { %v731_v19 = vpop.f32.mrb[1].mxu1 }
 0x1d8   :  { %v942_v21 = vpop.f32.mrb[0].mxu0 }
 0x1d9   :  { %v1275_v42 = vadd.f32 %v942_v21, %v729_v18  ;;  %v944_v57 = vpop.f32.mrb[1].mxu0 }
 0x1da   :  { %v1276_v62 = vadd.f32 %v944_v57, %v731_v19 }
 0x1db   :  { %947 = vst [vmem:[%s1706_s3] sm:$0xff] %v1275_v42 }
 0x1dc   :  { %948 = vst [vmem:[%s1706_s3 + $0x8] sm:$0xff] %v1276_v62 }
 0x1dd   :  { %953 = vsyncpa [#allocation3], 1 }
 0x1de   :  { %954 = vsyncpa [#allocation5], 1 }

</bundles_post_ra>
